<compile_context>
chip_gen: v6e
topology: v6e:2x2x1
jax: 0.10.0
libtpu: 0.0.40
codegen_flags: <defaults>
</compile_context>

<pallas_src>
import jax
import jax.numpy as jnp
import numpy as np
from jax.experimental import pallas as pl
from jax.experimental.pallas import tpu as pltpu


def _matmul_kernel(w_ref, a_ref, o_ref):
    # (Cout, K_pad) @ (K_pad, TM) on the MXU, f32 accumulation.
    # W^T is stationary (same block every grid step); output is channel-major
    # and lane-dense (TM is a multiple of 128 -> unmasked stores).
    o_ref[...] = jnp.dot(w_ref[...], a_ref[...],
                         preferred_element_type=jnp.float32)


def _round_up(x, m):
    return ((x + m - 1) // m) * m


def _choose_tm(M):
    # Even tile count (>=2) for a balanced v7x dual-TensorCore split; tiles as
    # large as possible (writeback-bound) but capped so double-buffered
    # (512, TM) f32 output tiles stay well under the scoped-VMEM default.
    MAX_TM = 3328  # 26 * 128  ->  2 * 512 * 3328 * 4 B ~= 13.6 MB out tiles
    M128 = _round_up(max(M, 1), 128)
    if M128 <= 128:
        return 128
    n_tiles = 2
    tm = _round_up(-(-M128 // n_tiles), 128)
    while tm > MAX_TM:
        n_tiles += 2
        tm = _round_up(-(-M128 // n_tiles), 128)
    return tm


def conv_transpose2d_pallas(x, weight, bias, *, stride, padding, dilation):
    """ConvTranspose2d forward (NCHW in/out). weight shape: (Cin, Cout, KH, KW).

    Parity fast-path requirement: dilation % stride == 0.  Then for ANY kh,
    kh*dilation ≡ 0 (mod stride), so an output pixel gets contributions iff
    (oh + padding) % stride == 0 (same for ow); all other pixels are exactly
    bias, independent of the padding value.  (Holds for this module's
    stride=2, padding=1, dilation=2 config; output_padding is assumed 0.)
    """
    N, Cin, H, W = x.shape
    _, Cout, KH, KW = weight.shape
    Ho = (H - 1) * stride - 2 * padding + dilation * (KH - 1) + 1
    Wo = (W - 1) * stride - 2 * padding + dilation * (KW - 1) + 1

    assert dilation % stride == 0, "parity fast-path needs dilation % stride == 0"
    r = (-padding) % stride            # active output positions: oh = stride*j + r
    d2 = dilation // stride            # tap step in input rows/cols
    off = (r + padding) // stride      # ih = j + off - kh*d2 (valid iff 0 <= ih < H)
    Ha = (Ho - r + stride - 1) // stride   # number of active output rows
    Wa = (Wo - r + stride - 1) // stride   # number of active output cols

    # ---- light im2col over the ACTIVE subgrid only, built directly as A^T ----
    # (stay in NCHW: no input transpose needed for the channel-major kernel)
    pad_top = max(0, (KH - 1) * d2 - off)
    pad_bot = max(0, Ha - 1 + off - (H - 1))
    pad_lft = max(0, (KW - 1) * d2 - off)
    pad_rgt = max(0, Wa - 1 + off - (W - 1))
    xp = jnp.pad(x, ((0, 0), (0, 0), (pad_top, pad_bot), (pad_lft, pad_rgt)))

    taps = []
    for kh in range(KH):
        hs = pad_top + off - kh * d2
        for kw in range(KW):
            ws = pad_lft + off - kw * d2
            taps.append(xp[:, :, hs:hs + Ha, ws:ws + Wa])    # (N, Cin, Ha, Wa)
    # Rows of A^T ordered (kh, kw, ci); columns ordered (n, ha, wa).
    stk = jnp.stack(taps, axis=0)                            # (KH*KW, N, Cin, Ha, Wa)
    M = N * Ha * Wa
    K = KH * KW * Cin
    aT = stk.transpose(0, 2, 1, 3, 4).reshape(K, M)          # (K, M) f32

    K_pad = _round_up(K, 32)           # 27 -> 32 (full-extent block dim); do NOT
                                       # pad to 128 — the op is writeback bound.
    TM = _choose_tm(M)                 # lane dim of the output tile (mult of 128)
    M_pad = _round_up(M, TM)

    ap = jnp.pad(aT, ((0, K_pad - K), (0, M_pad - M)))       # (K_pad, M_pad) f32
    # W^T with column order (kh, kw, ci) matching A^T's row order.
    w2 = jnp.transpose(weight, (1, 2, 3, 0)).reshape(Cout, K)
    wp = jnp.pad(w2, ((0, 0), (0, K_pad - K)))               # (Cout, K_pad) f32

    out_mm = pl.pallas_call(
        _matmul_kernel,
        out_shape=jax.ShapeDtypeStruct((Cout, M_pad), jnp.float32),
        grid_spec=pltpu.PrefetchScalarGridSpec(
            num_scalar_prefetch=0,
            grid=(M_pad // TM,),
            in_specs=[
                pl.BlockSpec((Cout, K_pad), lambda i: (0, 0)),   # stationary W^T
                pl.BlockSpec((K_pad, TM), lambda i: (0, i)),     # A^T column tile
            ],
            out_specs=pl.BlockSpec((Cout, TM), lambda i: (0, i)),
        ),
        compiler_params=pltpu.CompilerParams(
            dimension_semantics=("parallel",)),
    )(wp, ap)

    if M_pad != M:                       # avoided for the typical shapes here
        out_mm = out_mm[:, :M]

    # (Cout, M) with columns (n, ha, wa) -> NCHW active block.  For N=1 this is
    # a pure reshape (no data movement); for N>1 only the quarter-size active
    # tensor is transposed.
    if N == 1:
        out_active = out_mm.reshape(1, Cout, Ha, Wa)
    else:
        out_active = out_mm.reshape(Cout, N, Ha, Wa).transpose(1, 0, 2, 3)

    # Single-pass assembly: interior ("dilated") zero-pad places the active
    # values at the parity positions, everything else 0; the fused broadcast
    # bias add then makes non-active pixels exactly bias and active pixels
    # matmul + bias.  No scatter, no broadcast_to pass, no transpose.
    pad_hi_h = (Ho - 1) - (r + (Ha - 1) * stride)
    pad_hi_w = (Wo - 1) - (r + (Wa - 1) * stride)
    full = jax.lax.pad(
        out_active, jnp.zeros((), jnp.float32),
        ((0, 0, 0), (0, 0, 0),
         (r, pad_hi_h, stride - 1), (r, pad_hi_w, stride - 1)))
    return full + bias.reshape(1, Cout, 1, 1).astype(jnp.float32)


@jax.jit
def model_forward(x1, weight, bias):
    v1 = conv_transpose2d_pallas(x1, weight, bias, stride=2, padding=1, dilation=2)
    # v2 = max_pool2d(v1, 2, 2) and v3 = v2.reshape(-1, 512) are dead code in the
    # reference module (results unused; forward returns v1), so not materialized.
    return v1


if __name__ == "__main__":
    key = jax.random.PRNGKey(0)
    kx, kw, kb = jax.random.split(key, 3)

    Cin, Cout, KH, KW = 3, 512, 3, 3
    # Small spatial size (16x16) instead of 80x80; same channel/kernel config.
    x1 = jax.random.normal(kx, (1, Cin, 16, 16), jnp.float32)

    # Deterministic parameter init (PyTorch-style uniform(-bound, bound)).
    bound = 1.0 / np.sqrt(Cin * KH * KW)
    weight = jax.random.uniform(kw, (Cin, Cout, KH, KW), jnp.float32, -bound, bound)
    bias = jax.random.uniform(kb, (Cout,), jnp.float32, -bound, bound)

    v1 = jax.block_until_ready(model_forward(x1, weight, bias))
    assert v1.shape == (1, Cout, 33, 33), v1.shape

    # Cross-check against an XLA reference (transposed conv as lhs-dilated conv).
    w_conv = jnp.flip(weight, axis=(2, 3)).transpose(1, 0, 2, 3)  # (Cout,Cin,KH,KW)
    ref = jax.lax.conv_general_dilated(
        x1, w_conv,
        window_strides=(1, 1),
        padding=[(3, 3), (3, 3)],
        lhs_dilation=(2, 2),
        rhs_dilation=(2, 2),
        dimension_numbers=("NCHW", "OIHW", "NCHW"),
    ) + bias.reshape(1, Cout, 1, 1)
    # f32 operands with f32 accumulation; tolerance kept loose enough to be
    # robust to MXU default-precision pass decomposition.
    np.testing.assert_allclose(np.asarray(v1), np.asarray(ref), rtol=2e-2, atol=2e-2)

    print("KERNEL_OK")
</pallas_src>

<mosaic_0001>
module attributes {stable_mosaic.version = 11 : i64} {
  func.func @_matmul_kernel(%arg0: i32, %arg1: memref<512x32xf32, #tpu.memory_space<vmem>>, %arg2: memref<32x128xf32, #tpu.memory_space<vmem>>, %arg3: memref<512x128xf32, #tpu.memory_space<vmem>>) attributes {dimension_semantics = [#tpu.dimension_semantics<parallel>], iteration_bounds = array<i64: 2>, scalar_prefetch = 0 : i64, scratch_operands = 0 : i64, tpu.core_type = #tpu.core_type<tc>, window_params = [{pipeline_mode = #tpu.pipeline_mode<synchronous>, transform_indices = @transform_0, window_bounds = array<i64: 512, 32>}, {transform_indices = @transform_1, window_bounds = array<i64: 32, 128>}, {transform_indices = @transform_2, window_bounds = array<i64: 512, 128>}]} {
    %c0 = arith.constant 0 : index
    %c0_0 = arith.constant 0 : index
    %0 = vector.load %arg1[%c0, %c0_0] : memref<512x32xf32, #tpu.memory_space<vmem>>, vector<512x32xf32>
    %c0_1 = arith.constant 0 : index
    %c0_2 = arith.constant 0 : index
    %1 = vector.load %arg2[%c0_1, %c0_2] : memref<32x128xf32, #tpu.memory_space<vmem>>, vector<32x128xf32>
    %cst = arith.constant dense<0.000000e+00> : vector<512x128xf32>
    %2 = tpu.matmul %0, %1, %cst {dimension_numbers = #tpu.dot_dimension_numbers<[1], [0], [0], [1], [0, 0, 1, 1], [], []>} : vector<512x32xf32>, vector<32x128xf32>, vector<512x128xf32> -> vector<512x128xf32>
    %c0_3 = arith.constant 0 : index
    %c0_4 = arith.constant 0 : index
    %3 = vector.load %arg3[%c0_3, %c0_4] : memref<512x128xf32, #tpu.memory_space<vmem>>, vector<512x128xf32>
    tpu.vector_store %arg3[%c0_3, %c0_4], %2 {strides = array<i32>} : memref<512x128xf32, #tpu.memory_space<vmem>>, vector<512x128xf32>,
    return
  }
  func.func @transform_0(%arg0: i32) -> (i32, i32) {
    %c0_i32 = arith.constant 0 : i32
    %c0_i32_0 = arith.constant 0 : i32
    %c0_i32_1 = arith.constant 0 : i32
    return %c0_i32, %c0_i32_0 : i32, i32
  }
  func.func @transform_1(%arg0: i32) -> (i32, i32) {
    %c0_i32 = arith.constant 0 : i32
    %c0_i32_0 = arith.constant 0 : i32
    return %c0_i32, %arg0 : i32, i32
  }
  func.func @transform_2(%arg0: i32) -> (i32, i32) {
    %c0_i32 = arith.constant 0 : i32
    %c0_i32_0 = arith.constant 0 : i32
    return %c0_i32, %arg0 : i32, i32
  }
}

</mosaic_0001>

<bundles_post_ra>
// kernel: model_forward.1
= control target key start
LH: loop header
LB: loop body
LE: loop exit
PB: predicated region body
PF: predicated region fallthrough
CT: control target
= control target key end

     0   :  { %s1565_s9 = smov 0   ;;  %s1567_s10 = smov 0   ;;  %s2081_s0 = inlined_call_operand.vmem [shape: f32[512,32], index: 0, kind: input, shape index: {}]   ;;  %s2082_s1 = inlined_call_operand.vmem [shape: f32[32,256], index: 1, kind: input, shape index: {}]   ;;  %s2083_s2 = inlined_call_operand.vmem [shape: f32[512,256], index: 2, kind: output, shape index: {}]  }
   0x1   :  { %s1569_s11 = smov 0  }
   0x2 LB: > { %s1245_s12 = sadd.s32 4294967295, %s1548_s11   ;;  %s1582_s13 = sadd.s32 1, %s1548_s11   ;;  %s1548_s11 = sphi %s1569_s11, %s2087_s11   ;;  %s1544_s10 = sphi %s1567_s10, %s2086_s10   ;;  %s1540_s9 = sphi %s1565_s9, %s2085_s9  }
   0x3   : > { %s37_s14 = ssub.s32 %s1548_s11, %s1582_s13  ;;  %s40_s15 = sadd.s32 1, %s1544_s10 }
   0x4   : > { %p38_p0 = scmp.eq.s32.totalorder %s37_s14, 0  ;;  %p47_p1 = scmp.ne.s32.totalorder %s1544_s10, %s1540_s9 }
   0x5   : > { %p48_p2 = scmp.eq.s32.totalorder %s1548_s11, 0  ;;  %p77_p3 = scmp.eq.s32.totalorder %s1245_s12, 1 }
   0x6   : > { %s1593_s16 = scalar_select %p38_p0, %s1544_s10, %s40_s15  }
   0x7   : > { %p49_p4 = por %p48_p2, %p47_p1  ;;  %p1595_p5 = por %p77_p3, %p47_p1 }
   0x8   : > { %p1248_p6 = scmp.ge.s32.totalorder %s1548_s11, 2 }
   0xa   : > { %102 = sbr.rel (%p1248_p6) target bundleno = 21 (0x15), region = 20 }
   0xf   : > { %105 = sbr.rel (!%p49_p4) target bundleno = 21 (0x15), region = 24  ;;  %s107_s18 = sand.u32 (%p49_p4), 1, %s1544_s10  }
  0x10   : > { %s1250_s19 = sshll.u32 (%p49_p4), %s1548_s11, 3  ;;  %s1249_s20 = sshll.u32 (%p49_p4), %s107_s18, 5 }
  0x11   : > { %s111_s23 = scalar_lea.vmem (%p49_p4), %s2082_s1, %s1250_s19  ;;  %s109_s24 = scalar_lea.vmem (%p49_p4), [#allocation2], %s1249_s20 }
  0x12   : > { %v146_v0 = vld [vmem:[%s111_s23] sm:$0xff] (%p49_p4)  ;;  %v148_v1 = vld [vmem:[%s111_s23 + $0x10] sm:$0xff] (%p49_p4) }
  0x13   : > { %v150_v2 = vld [vmem:[%s111_s23 + $0x20] sm:$0xff] (%p49_p4)  ;;  %147 = vst [vmem:[%s109_s24] sm:$0xff] (%p49_p4), %v146_v0  ;;  %149 = vst [vmem:[%s109_s24 + $0x8] sm:$0xff] (%p49_p4), %v148_v1  ;;  %v152_v3 = vld [vmem:[%s111_s23 + $0x30] sm:$0xff] (%p49_p4) }
  0x14   : > { %151 = vst [vmem:[%s109_s24 + $0x10] sm:$0xff] %v150_v2  ;;  %153 = vst [vmem:[%s109_s24 + $0x18] sm:$0xff] %v152_v3 }
  0x15 PF: > { %p1251_p7 = scmp.ge.s32.totalorder %s1548_s11, 1  ;;  %p158_p8 = scmp.lt.s32.totalorder %s1548_s11, 3 }
  0x17   : > { %p159_p9 = pnand %p1251_p7, %p158_p8 }
  0x18   : > { %s165_s25 = sand.u32 (!%p159_p9), 1, %s1540_s9  }
  0x19   : > { %162 = sbr.rel (%p159_p9) target bundleno = 307 (0x133), region = 62  ;;  %s1252_s30 = sshll.u32 (!%p159_p9), %s165_s25, 5 }
  0x1a   : > { %s167_s3 = scalar_lea.vmem (!%p159_p9), [#allocation2], %s1252_s30  ;;  %s1253_s8 = sshll.u32 (!%p159_p9), %s165_s25, 9 }
  0x1b   : > { %s1868_s14 = scalar_lea.vmem (!%p159_p9), [#allocation3], %s1253_s8 }
  0x1e   : > { %v185_v4 = vld [vmem:[%s2081_s0] sm:$0xff]  ;;  %vm253_vm0 = vcmask 261120   ;;  %v252_v6 = vld [vmem:[%s167_s3 + $0x18] sm:$0xff]  ;;  %v251_v7 = vld [vmem:[%s167_s3 + $0x10] sm:$0xff]  ;;  %s1319_s9 = sshll.u32 (%p1595_p5), %s1245_s12, 3 }
  0x1f   : > { %v217_v5 = vld [vmem:[%s2081_s0 + $0x100] sm:$0xff]  ;;  %1398 = vmatprep.mubr.msk.f32.mxu0 %vm253_vm0, %v185_v4  ;;  %1390 = vmatprep.subr.mxu0 %v252_v6  ;;  %v250_v8 = vld [vmem:[%s167_s3 + $0x8] sm:$0xff]  ;;  %v187_v12 = vld [vmem:[%s2081_s0 + $0x10] sm:$0xff]  ;;  %s1944_s17 = scalar_lea.vmem (%p1595_p5), %s2083_s2, %s1319_s9 }
  0x20   : > { %1446 = vmatprep.mubr.msk.f32.mxu1 %vm253_vm0, %v217_v5  ;;  %1494 = vmatprep.subr.mxu1 %v252_v6  ;;  %v249_v9 = vld [vmem:[%s167_s3] sm:$0xff]  ;;  %v186_v10 = vld [vmem:[%s2081_s0 + $0x8] sm:$0xff]  ;;  %v219_v13 = vld [vmem:[%s2081_s0 + $0x110] sm:$0xff] }
  0x21   : > { %1391 = vmatpush3.msra.mxu0 %v252_v6  ;;  %1498 = vmatpush3.msra.mxu1 %v252_v6  ;;  %v218_v11 = vld [vmem:[%s2081_s0 + $0x108] sm:$0xff]  ;;  %v188_v14 = vld [vmem:[%s2081_s0 + $0x18] sm:$0xff]  ;;  %v189_v16 = vld [vmem:[%s2081_s0 + $0x20] sm:$0xff] }
  0x22   : > { %1392 = vmatprep.subr.mxu0 %v251_v7  ;;  %1495 = vmatprep.subr.mxu1 %v251_v7  ;;  %v220_v15 = vld [vmem:[%s2081_s0 + $0x118] sm:$0xff]  ;;  %v221_v17 = vld [vmem:[%s2081_s0 + $0x120] sm:$0xff]  ;;  %v190_v18 = vld [vmem:[%s2081_s0 + $0x28] sm:$0xff] }
  0x23   : > { %1393 = vmatpush3.msra.mxu0 %v251_v7  ;;  %1499 = vmatpush3.msra.mxu1 %v251_v7  ;;  %v222_v19 = vld [vmem:[%s2081_s0 + $0x128] sm:$0xff]  ;;  %v191_v20 = vld [vmem:[%s2081_s0 + $0x30] sm:$0xff]  ;;  %v192_v22 = vld [vmem:[%s2081_s0 + $0x38] sm:$0xff] }
  0x24   : > { %1394 = vmatprep.subr.mxu0 %v250_v8  ;;  %1496 = vmatprep.subr.mxu1 %v250_v8  ;;  %v223_v21 = vld [vmem:[%s2081_s0 + $0x130] sm:$0xff]  ;;  %v224_v23 = vld [vmem:[%s2081_s0 + $0x138] sm:$0xff]  ;;  %v193_v24 = vld [vmem:[%s2081_s0 + $0x40] sm:$0xff] }
  0x25   : > { %1395 = vmatpush3.msra.mxu0 %v250_v8  ;;  %1500 = vmatpush3.msra.mxu1 %v250_v8  ;;  %v225_v25 = vld [vmem:[%s2081_s0 + $0x140] sm:$0xff]  ;;  %v194_v26 = vld [vmem:[%s2081_s0 + $0x48] sm:$0xff]  ;;  %v195_v28 = vld [vmem:[%s2081_s0 + $0x50] sm:$0xff] }
  0x26   : > { %1396 = vmatprep.subr.mxu0 %v249_v9  ;;  %1497 = vmatprep.subr.mxu1 %v249_v9  ;;  %v226_v27 = vld [vmem:[%s2081_s0 + $0x148] sm:$0xff]  ;;  %v227_v29 = vld [vmem:[%s2081_s0 + $0x150] sm:$0xff]  ;;  %v196_v30 = vld [vmem:[%s2081_s0 + $0x58] sm:$0xff] }
  0x27   : > { %1397 = vmatpush3.msra.mxu0 %v249_v9  ;;  %1501 = vmatpush3.msra.mxu1 %v249_v9  ;;  %v228_v31 = vld [vmem:[%s2081_s0 + $0x158] sm:$0xff]  ;;  %v197_v32 = vld [vmem:[%s2081_s0 + $0x60] sm:$0xff]  ;;  %v198_v34 = vld [vmem:[%s2081_s0 + $0x68] sm:$0xff] }
  0x28   : > { %1399 = vmatmul.mubr.msk.f32.vlgmr.msra.gmra.mxu0 %vm253_vm0, %v186_v10  ;;  %1447 = vmatmul.mubr.msk.f32.vlgmr.msra.gmra.mxu1 %vm253_vm0, %v218_v11  ;;  %v229_v33 = vld [vmem:[%s2081_s0 + $0x160] sm:$0xff]  ;;  %v230_v35 = vld [vmem:[%s2081_s0 + $0x168] sm:$0xff]  ;;  %v199_v36 = vld [vmem:[%s2081_s0 + $0x70] sm:$0xff] }
  0x29   : > { %1401 = vmatprep.mubr.msk.f32.mxu0 %vm253_vm0, %v187_v12  ;;  %1449 = vmatprep.mubr.msk.f32.mxu1 %vm253_vm0, %v219_v13  ;;  %v231_v37 = vld [vmem:[%s2081_s0 + $0x170] sm:$0xff]  ;;  %v200_v38 = vld [vmem:[%s2081_s0 + $0x78] sm:$0xff]  ;;  %v201_v40 = vld [vmem:[%s2081_s0 + $0x80] sm:$0xff] }
  0x2a   : > { %v232_v39 = vld [vmem:[%s2081_s0 + $0x178] sm:$0xff]  ;;  %v233_v41 = vld [vmem:[%s2081_s0 + $0x180] sm:$0xff]  ;;  %v202_v42 = vld [vmem:[%s2081_s0 + $0x88] sm:$0xff] }
  0x2b   : > { %v234_v43 = vld [vmem:[%s2081_s0 + $0x188] sm:$0xff]  ;;  %v203_v44 = vld [vmem:[%s2081_s0 + $0x90] sm:$0xff]  ;;  %v204_v46 = vld [vmem:[%s2081_s0 + $0x98] sm:$0xff] }
  0x2c   : > { %1402 = vmatmul.mubr.msk.f32.gmra.mxu0 %vm253_vm0, %v188_v14  ;;  %1450 = vmatmul.mubr.msk.f32.gmra.mxu1 %vm253_vm0, %v220_v15  ;;  %v235_v45 = vld [vmem:[%s2081_s0 + $0x190] sm:$0xff]  ;;  %v236_v47 = vld [vmem:[%s2081_s0 + $0x198] sm:$0xff]  ;;  %v205_v48 = vld [vmem:[%s2081_s0 + $0xa0] sm:$0xff] }
  0x2d   : > { %1404 = vmatprep.mubr.msk.f32.mxu0 %vm253_vm0, %v189_v16  ;;  %1452 = vmatprep.mubr.msk.f32.mxu1 %vm253_vm0, %v221_v17  ;;  %v237_v49 = vld [vmem:[%s2081_s0 + $0x1a0] sm:$0xff]  ;;  %v206_v50 = vld [vmem:[%s2081_s0 + $0xa8] sm:$0xff]  ;;  %v207_v52 = vld [vmem:[%s2081_s0 + $0xb0] sm:$0xff] }
  0x2e   : > { %v238_v51 = vld [vmem:[%s2081_s0 + $0x1a8] sm:$0xff]  ;;  %v239_v53 = vld [vmem:[%s2081_s0 + $0x1b0] sm:$0xff]  ;;  %v208_v54 = vld [vmem:[%s2081_s0 + $0xb8] sm:$0xff] }
  0x2f   : > { %v240_v55 = vld [vmem:[%s2081_s0 + $0x1b8] sm:$0xff]  ;;  %v209_v56 = vld [vmem:[%s2081_s0 + $0xc0] sm:$0xff]  ;;  %v210_v58 = vld [vmem:[%s2081_s0 + $0xc8] sm:$0xff] }
  0x30   : > { %1405 = vmatmul.mubr.msk.f32.gmra.mxu0 %vm253_vm0, %v190_v18  ;;  %1453 = vmatmul.mubr.msk.f32.gmra.mxu1 %vm253_vm0, %v222_v19  ;;  %v241_v57 = vld [vmem:[%s2081_s0 + $0x1c0] sm:$0xff]  ;;  %v242_v59 = vld [vmem:[%s2081_s0 + $0x1c8] sm:$0xff]  ;;  %v211_v60 = vld [vmem:[%s2081_s0 + $0xd0] sm:$0xff] }
  0x31   : > { %1407 = vmatprep.mubr.msk.f32.mxu0 %vm253_vm0, %v191_v20  ;;  %1455 = vmatprep.mubr.msk.f32.mxu1 %vm253_vm0, %v223_v21  ;;  %v243_v61 = vld [vmem:[%s2081_s0 + $0x1d0] sm:$0xff]  ;;  %v212_v62 = vld [vmem:[%s2081_s0 + $0xd8] sm:$0xff]  ;;  %v213_v0 = vld [vmem:[%s2081_s0 + $0xe0] sm:$0xff] }
  0x32   : > { %v244_v63 = vld [vmem:[%s2081_s0 + $0x1d8] sm:$0xff]  ;;  %v245_v1 = vld [vmem:[%s2081_s0 + $0x1e0] sm:$0xff]  ;;  %v214_v2 = vld [vmem:[%s2081_s0 + $0xe8] sm:$0xff] }
  0x33   : > { %v246_v3 = vld [vmem:[%s2081_s0 + $0x1e8] sm:$0xff]  ;;  %v215_v4 = vld [vmem:[%s2081_s0 + $0xf0] sm:$0xff]  ;;  %v216_v6 = vld [vmem:[%s2081_s0 + $0xf8] sm:$0xff] }
  0x34   : > { %1408 = vmatmul.mubr.msk.f32.gmra.mxu0 %vm253_vm0, %v192_v22  ;;  %1456 = vmatmul.mubr.msk.f32.gmra.mxu1 %vm253_vm0, %v224_v23  ;;  %v247_v5 = vld [vmem:[%s2081_s0 + $0x1f0] sm:$0xff]  ;;  %v248_v7 = vld [vmem:[%s2081_s0 + $0x1f8] sm:$0xff] }
  0x35   : > { %1410 = vmatprep.mubr.msk.f32.mxu0 %vm253_vm0, %v193_v24  ;;  %1458 = vmatprep.mubr.msk.f32.mxu1 %vm253_vm0, %v225_v25 }
  0x38   : > { %1411 = vmatmul.mubr.msk.f32.gmra.mxu0 %vm253_vm0, %v194_v26  ;;  %1459 = vmatmul.mubr.msk.f32.gmra.mxu1 %vm253_vm0, %v226_v27 }
  0x39   : > { %1413 = vmatprep.mubr.msk.f32.mxu0 %vm253_vm0, %v195_v28  ;;  %1461 = vmatprep.mubr.msk.f32.mxu1 %vm253_vm0, %v227_v29 }
  0x3c   : > { %1414 = vmatmul.mubr.msk.f32.gmra.mxu0 %vm253_vm0, %v196_v30  ;;  %1462 = vmatmul.mubr.msk.f32.gmra.mxu1 %vm253_vm0, %v228_v31 }
  0x3d   : > { %1416 = vmatprep.mubr.msk.f32.mxu0 %vm253_vm0, %v197_v32  ;;  %1464 = vmatprep.mubr.msk.f32.mxu1 %vm253_vm0, %v229_v33 }
  0x40   : > { %1417 = vmatmul.mubr.msk.f32.gmra.mxu0 %vm253_vm0, %v198_v34  ;;  %1465 = vmatmul.mubr.msk.f32.gmra.mxu1 %vm253_vm0, %v230_v35 }
  0x41   : > { %1419 = vmatprep.mubr.msk.f32.mxu0 %vm253_vm0, %v199_v36  ;;  %1467 = vmatprep.mubr.msk.f32.mxu1 %vm253_vm0, %v231_v37 }
  0x44   : > { %1420 = vmatmul.mubr.msk.f32.gmra.mxu0 %vm253_vm0, %v200_v38  ;;  %1468 = vmatmul.mubr.msk.f32.gmra.mxu1 %vm253_vm0, %v232_v39 }
  0x45   : > { %1422 = vmatprep.mubr.msk.f32.mxu0 %vm253_vm0, %v201_v40  ;;  %1470 = vmatprep.mubr.msk.f32.mxu1 %vm253_vm0, %v233_v41 }
  0x48   : > { %1423 = vmatmul.mubr.msk.f32.gmra.mxu0 %vm253_vm0, %v202_v42  ;;  %1471 = vmatmul.mubr.msk.f32.gmra.mxu1 %vm253_vm0, %v234_v43 }
  0x49   : > { %1425 = vmatprep.mubr.msk.f32.mxu0 %vm253_vm0, %v203_v44  ;;  %1473 = vmatprep.mubr.msk.f32.mxu1 %vm253_vm0, %v235_v45 }
  0x4c   : > { %1426 = vmatmul.mubr.msk.f32.gmra.mxu0 %vm253_vm0, %v204_v46  ;;  %1474 = vmatmul.mubr.msk.f32.gmra.mxu1 %vm253_vm0, %v236_v47 }
  0x4d   : > { %1428 = vmatprep.mubr.msk.f32.mxu0 %vm253_vm0, %v205_v48  ;;  %1476 = vmatprep.mubr.msk.f32.mxu1 %vm253_vm0, %v237_v49 }
  0x50   : > { %1429 = vmatmul.mubr.msk.f32.gmra.mxu0 %vm253_vm0, %v206_v50  ;;  %1477 = vmatmul.mubr.msk.f32.gmra.mxu1 %vm253_vm0, %v238_v51 }
  0x51   : > { %1431 = vmatprep.mubr.msk.f32.mxu0 %vm253_vm0, %v207_v52  ;;  %1479 = vmatprep.mubr.msk.f32.mxu1 %vm253_vm0, %v239_v53 }
  0x54   : > { %1432 = vmatmul.mubr.msk.f32.gmra.mxu0 %vm253_vm0, %v208_v54  ;;  %1480 = vmatmul.mubr.msk.f32.gmra.mxu1 %vm253_vm0, %v240_v55 }
  0x55   : > { %1434 = vmatprep.mubr.msk.f32.mxu0 %vm253_vm0, %v209_v56  ;;  %1482 = vmatprep.mubr.msk.f32.mxu1 %vm253_vm0, %v241_v57 }
  0x58   : > { %1435 = vmatmul.mubr.msk.f32.gmra.mxu0 %vm253_vm0, %v210_v58  ;;  %1483 = vmatmul.mubr.msk.f32.gmra.mxu1 %vm253_vm0, %v242_v59 }
  0x59   : > { %1437 = vmatprep.mubr.msk.f32.mxu0 %vm253_vm0, %v211_v60  ;;  %1485 = vmatprep.mubr.msk.f32.mxu1 %vm253_vm0, %v243_v61 }
  0x5c   : > { %1438 = vmatmul.mubr.msk.f32.gmra.mxu0 %vm253_vm0, %v212_v62  ;;  %1486 = vmatmul.mubr.msk.f32.gmra.mxu1 %vm253_vm0, %v244_v63 }
  0x5d   : > { %1440 = vmatprep.mubr.msk.f32.mxu0 %vm253_vm0, %v213_v0  ;;  %1488 = vmatprep.mubr.msk.f32.mxu1 %vm253_vm0, %v245_v1 }
  0x60   : > { %1441 = vmatmul.mubr.msk.f32.gmra.mxu0 %vm253_vm0, %v214_v2  ;;  %1489 = vmatmul.mubr.msk.f32.gmra.mxu1 %vm253_vm0, %v246_v3 }
  0x61   : > { %1443 = vmatprep.mubr.msk.f32.mxu0 %vm253_vm0, %v215_v4  ;;  %1491 = vmatprep.mubr.msk.f32.mxu1 %vm253_vm0, %v247_v5 }
  0x64   : > { %1444 = vmatmul.mubr.msk.f32.gmra.mxu0 %vm253_vm0, %v216_v6  ;;  %1492 = vmatmul.mubr.msk.f32.gmra.mxu1 %vm253_vm0, %v248_v7 }
  0xe8   : > { %v1400_v8 = vpop.f32.mrf.mxu0  ;;  %v1448_v9 = vpop.f32.mrf.mxu1 }
  0xe9   : > { %832 = vst [vmem:[%s1868_s14 + $0x8] sm:$0xff] %v1400_v8  ;;  %864 = vst [vmem:[%s1868_s14 + $0x108] sm:$0xff] %v1448_v9 }
  0xea   : > { %v512_v10 = vpop.f32.mrf.mxu0  ;;  %v672_v11 = vpop.f32.mrf.mxu1 }
  0xeb   : > { %831 = vst [vmem:[%s1868_s14] sm:$0xff] %v512_v10  ;;  %863 = vst [vmem:[%s1868_s14 + $0x100] sm:$0xff] %v672_v11 }
  0xec   : > { %v1403_v12 = vpop.f32.mrf.mxu0  ;;  %v1451_v13 = vpop.f32.mrf.mxu1 }
  0xed   : > { %834 = vst [vmem:[%s1868_s14 + $0x18] sm:$0xff] %v1403_v12  ;;  %866 = vst [vmem:[%s1868_s14 + $0x118] sm:$0xff] %v1451_v13 }
  0xee   : > { %v522_v14 = vpop.f32.mrf.mxu0  ;;  %v682_v15 = vpop.f32.mrf.mxu1 }
  0xef   : > { %833 = vst [vmem:[%s1868_s14 + $0x10] sm:$0xff] %v522_v14  ;;  %865 = vst [vmem:[%s1868_s14 + $0x110] sm:$0xff] %v682_v15 }
  0xf0   : > { %v1406_v16 = vpop.f32.mrf.mxu0  ;;  %v1454_v17 = vpop.f32.mrf.mxu1  ;;  %v1060_v9 = vld [vmem:[%s1868_s14 + $0x8] sm:$0xff] (%p1595_p5) }
  0xf1   : > { %836 = vst [vmem:[%s1868_s14 + $0x28] sm:$0xff] %v1406_v16  ;;  %868 = vst [vmem:[%s1868_s14 + $0x128] sm:$0xff] %v1454_v17 }
  0xf2   : > { %v532_v18 = vpop.f32.mrf.mxu0  ;;  %v692_v19 = vpop.f32.mrf.mxu1  ;;  %v1058_v8 = vld [vmem:[%s1868_s14] sm:$0xff] (%p1595_p5)  ;;  %1061 = vst [vmem:[%s1944_s17 + $0x10] sm:$0xff] (%p1595_p5), %v1060_v9 }
  0xf3   : > { %835 = vst [vmem:[%s1868_s14 + $0x20] sm:$0xff] %v532_v18  ;;  %867 = vst [vmem:[%s1868_s14 + $0x120] sm:$0xff] %v692_v19 }
  0xf4   : > { %v1409_v20 = vpop.f32.mrf.mxu0  ;;  %v1457_v21 = vpop.f32.mrf.mxu1  ;;  %v1064_v11 = vld [vmem:[%s1868_s14 + $0x18] sm:$0xff] (%p1595_p5)  ;;  %1059 = vst [vmem:[%s1944_s17] sm:$0xff] (%p1595_p5), %v1058_v8 }
  0xf5   : > { %838 = vst [vmem:[%s1868_s14 + $0x38] sm:$0xff] %v1409_v20  ;;  %870 = vst [vmem:[%s1868_s14 + $0x138] sm:$0xff] %v1457_v21 }
  0xf6   : > { %v542_v22 = vpop.f32.mrf.mxu0  ;;  %v702_v23 = vpop.f32.mrf.mxu1  ;;  %v1062_v10 = vld [vmem:[%s1868_s14 + $0x10] sm:$0xff] (%p1595_p5)  ;;  %1065 = vst [vmem:[%s1944_s17 + $0x30] sm:$0xff] (%p1595_p5), %v1064_v11 }
  0xf7   : > { %837 = vst [vmem:[%s1868_s14 + $0x30] sm:$0xff] %v542_v22  ;;  %869 = vst [vmem:[%s1868_s14 + $0x130] sm:$0xff] %v702_v23 }
  0xf8   : > { %v1412_v24 = vpop.f32.mrf.mxu0  ;;  %v1460_v25 = vpop.f32.mrf.mxu1  ;;  %v1068_v13 = vld [vmem:[%s1868_s14 + $0x28] sm:$0xff] (%p1595_p5)  ;;  %1063 = vst [vmem:[%s1944_s17 + $0x20] sm:$0xff] (%p1595_p5), %v1062_v10 }
  0xf9   : > { %840 = vst [vmem:[%s1868_s14 + $0x48] sm:$0xff] %v1412_v24  ;;  %872 = vst [vmem:[%s1868_s14 + $0x148] sm:$0xff] %v1460_v25 }
  0xfa   : > { %v552_v26 = vpop.f32.mrf.mxu0  ;;  %v712_v27 = vpop.f32.mrf.mxu1  ;;  %v1066_v12 = vld [vmem:[%s1868_s14 + $0x20] sm:$0xff] (%p1595_p5)  ;;  %1069 = vst [vmem:[%s1944_s17 + $0x50] sm:$0xff] (%p1595_p5), %v1068_v13 }
  0xfb   : > { %839 = vst [vmem:[%s1868_s14 + $0x40] sm:$0xff] %v552_v26  ;;  %871 = vst [vmem:[%s1868_s14 + $0x140] sm:$0xff] %v712_v27 }
  0xfc   : > { %v1415_v28 = vpop.f32.mrf.mxu0  ;;  %v1463_v29 = vpop.f32.mrf.mxu1  ;;  %1067 = vst [vmem:[%s1944_s17 + $0x40] sm:$0xff] (%p1595_p5), %v1066_v12  ;;  %v1072_v15 = vld [vmem:[%s1868_s14 + $0x38] sm:$0xff] (%p1595_p5) }
  0xfd   : > { %842 = vst [vmem:[%s1868_s14 + $0x58] sm:$0xff] %v1415_v28  ;;  %874 = vst [vmem:[%s1868_s14 + $0x158] sm:$0xff] %v1463_v29 }
  0xfe   : > { %v562_v30 = vpop.f32.mrf.mxu0  ;;  %v722_v31 = vpop.f32.mrf.mxu1  ;;  %v1070_v14 = vld [vmem:[%s1868_s14 + $0x30] sm:$0xff] (%p1595_p5)  ;;  %1073 = vst [vmem:[%s1944_s17 + $0x70] sm:$0xff] (%p1595_p5), %v1072_v15 }
  0xff   : > { %841 = vst [vmem:[%s1868_s14 + $0x50] sm:$0xff] %v562_v30  ;;  %873 = vst [vmem:[%s1868_s14 + $0x150] sm:$0xff] %v722_v31 }
 0x100   : > { %v1418_v32 = vpop.f32.mrf.mxu0  ;;  %v1466_v33 = vpop.f32.mrf.mxu1  ;;  %1071 = vst [vmem:[%s1944_s17 + $0x60] sm:$0xff] (%p1595_p5), %v1070_v14  ;;  %v1076_v17 = vld [vmem:[%s1868_s14 + $0x48] sm:$0xff] (%p1595_p5) }
 0x101   : > { %844 = vst [vmem:[%s1868_s14 + $0x68] sm:$0xff] %v1418_v32  ;;  %876 = vst [vmem:[%s1868_s14 + $0x168] sm:$0xff] %v1466_v33 }
 0x102   : > { %v572_v34 = vpop.f32.mrf.mxu0  ;;  %v732_v35 = vpop.f32.mrf.mxu1  ;;  %v1074_v16 = vld [vmem:[%s1868_s14 + $0x40] sm:$0xff] (%p1595_p5)  ;;  %1077 = vst [vmem:[%s1944_s17 + $0x90] sm:$0xff] (%p1595_p5), %v1076_v17 }
 0x103   : > { %843 = vst [vmem:[%s1868_s14 + $0x60] sm:$0xff] %v572_v34  ;;  %875 = vst [vmem:[%s1868_s14 + $0x160] sm:$0xff] %v732_v35 }
 0x104   : > { %v1421_v36 = vpop.f32.mrf.mxu0  ;;  %v1469_v37 = vpop.f32.mrf.mxu1  ;;  %1075 = vst [vmem:[%s1944_s17 + $0x80] sm:$0xff] (%p1595_p5), %v1074_v16  ;;  %v1080_v19 = vld [vmem:[%s1868_s14 + $0x58] sm:$0xff] (%p1595_p5) }
 0x105   : > { %846 = vst [vmem:[%s1868_s14 + $0x78] sm:$0xff] %v1421_v36  ;;  %878 = vst [vmem:[%s1868_s14 + $0x178] sm:$0xff] %v1469_v37 }
 0x106   : > { %v582_v38 = vpop.f32.mrf.mxu0  ;;  %v742_v39 = vpop.f32.mrf.mxu1  ;;  %v1078_v18 = vld [vmem:[%s1868_s14 + $0x50] sm:$0xff] (%p1595_p5)  ;;  %1081 = vst [vmem:[%s1944_s17 + $0xb0] sm:$0xff] (%p1595_p5), %v1080_v19 }
 0x107   : > { %845 = vst [vmem:[%s1868_s14 + $0x70] sm:$0xff] %v582_v38  ;;  %877 = vst [vmem:[%s1868_s14 + $0x170] sm:$0xff] %v742_v39 }
 0x108   : > { %v1424_v40 = vpop.f32.mrf.mxu0  ;;  %v1472_v41 = vpop.f32.mrf.mxu1  ;;  %1079 = vst [vmem:[%s1944_s17 + $0xa0] sm:$0xff] (%p1595_p5), %v1078_v18  ;;  %v1084_v21 = vld [vmem:[%s1868_s14 + $0x68] sm:$0xff] (%p1595_p5) }
 0x109   : > { %848 = vst [vmem:[%s1868_s14 + $0x88] sm:$0xff] %v1424_v40  ;;  %880 = vst [vmem:[%s1868_s14 + $0x188] sm:$0xff] %v1472_v41  ;;  %v1122_v40 = vld [vmem:[%s1868_s14 + $0x100] sm:$0xff] (%p1595_p5)  ;;  %v1124_v41 = vld [vmem:[%s1868_s14 + $0x108] sm:$0xff] (%p1595_p5) }
 0x10a   : > { %v592_v42 = vpop.f32.mrf.mxu0  ;;  %v752_v43 = vpop.f32.mrf.mxu1  ;;  %v1082_v20 = vld [vmem:[%s1868_s14 + $0x60] sm:$0xff] (%p1595_p5)  ;;  %1085 = vst [vmem:[%s1944_s17 + $0xd0] sm:$0xff] (%p1595_p5), %v1084_v21  ;;  %1123 = vst [vmem:[%s1944_s17 + $0x200] sm:$0xff] (%p1595_p5), %v1122_v40 }
 0x10b   : > { %847 = vst [vmem:[%s1868_s14 + $0x80] sm:$0xff] %v592_v42  ;;  %879 = vst [vmem:[%s1868_s14 + $0x180] sm:$0xff] %v752_v43  ;;  %v1126_v42 = vld [vmem:[%s1868_s14 + $0x110] sm:$0xff] (%p1595_p5)  ;;  %v1128_v43 = vld [vmem:[%s1868_s14 + $0x118] sm:$0xff] (%p1595_p5) }
 0x10c   : > { %v1427_v44 = vpop.f32.mrf.mxu0  ;;  %v1475_v45 = vpop.f32.mrf.mxu1  ;;  %1083 = vst [vmem:[%s1944_s17 + $0xc0] sm:$0xff] (%p1595_p5), %v1082_v20  ;;  %v1088_v23 = vld [vmem:[%s1868_s14 + $0x78] sm:$0xff] (%p1595_p5)  ;;  %1125 = vst [vmem:[%s1944_s17 + $0x210] sm:$0xff] (%p1595_p5), %v1124_v41 }
 0x10d   : > { %850 = vst [vmem:[%s1868_s14 + $0x98] sm:$0xff] %v1427_v44  ;;  %882 = vst [vmem:[%s1868_s14 + $0x198] sm:$0xff] %v1475_v45  ;;  %v1130_v44 = vld [vmem:[%s1868_s14 + $0x120] sm:$0xff] (%p1595_p5)  ;;  %v1132_v45 = vld [vmem:[%s1868_s14 + $0x128] sm:$0xff] (%p1595_p5) }
 0x10e   : > { %v602_v46 = vpop.f32.mrf.mxu0  ;;  %v762_v47 = vpop.f32.mrf.mxu1  ;;  %v1086_v22 = vld [vmem:[%s1868_s14 + $0x70] sm:$0xff] (%p1595_p5)  ;;  %1089 = vst [vmem:[%s1944_s17 + $0xf0] sm:$0xff] (%p1595_p5), %v1088_v23  ;;  %1127 = vst [vmem:[%s1944_s17 + $0x220] sm:$0xff] (%p1595_p5), %v1126_v42 }
 0x10f   : > { %849 = vst [vmem:[%s1868_s14 + $0x90] sm:$0xff] %v602_v46  ;;  %881 = vst [vmem:[%s1868_s14 + $0x190] sm:$0xff] %v762_v47  ;;  %v1134_v46 = vld [vmem:[%s1868_s14 + $0x130] sm:$0xff] (%p1595_p5)  ;;  %v1136_v47 = vld [vmem:[%s1868_s14 + $0x138] sm:$0xff] (%p1595_p5) }
 0x110   : > { %v1430_v48 = vpop.f32.mrf.mxu0  ;;  %v1478_v49 = vpop.f32.mrf.mxu1  ;;  %1087 = vst [vmem:[%s1944_s17 + $0xe0] sm:$0xff] (%p1595_p5), %v1086_v22  ;;  %v1092_v25 = vld [vmem:[%s1868_s14 + $0x88] sm:$0xff] (%p1595_p5)  ;;  %1129 = vst [vmem:[%s1944_s17 + $0x230] sm:$0xff] (%p1595_p5), %v1128_v43 }
 0x111   : > { %852 = vst [vmem:[%s1868_s14 + $0xa8] sm:$0xff] %v1430_v48  ;;  %884 = vst [vmem:[%s1868_s14 + $0x1a8] sm:$0xff] %v1478_v49  ;;  %v1138_v48 = vld [vmem:[%s1868_s14 + $0x140] sm:$0xff] (%p1595_p5)  ;;  %v1140_v49 = vld [vmem:[%s1868_s14 + $0x148] sm:$0xff] (%p1595_p5) }
 0x112   : > { %v612_v50 = vpop.f32.mrf.mxu0  ;;  %v772_v51 = vpop.f32.mrf.mxu1  ;;  %v1090_v24 = vld [vmem:[%s1868_s14 + $0x80] sm:$0xff] (%p1595_p5)  ;;  %1093 = vst [vmem:[%s1944_s17 + $0x110] sm:$0xff] (%p1595_p5), %v1092_v25  ;;  %1131 = vst [vmem:[%s1944_s17 + $0x240] sm:$0xff] (%p1595_p5), %v1130_v44 }
 0x113   : > { %851 = vst [vmem:[%s1868_s14 + $0xa0] sm:$0xff] %v612_v50  ;;  %883 = vst [vmem:[%s1868_s14 + $0x1a0] sm:$0xff] %v772_v51  ;;  %v1142_v50 = vld [vmem:[%s1868_s14 + $0x150] sm:$0xff] (%p1595_p5)  ;;  %v1144_v51 = vld [vmem:[%s1868_s14 + $0x158] sm:$0xff] (%p1595_p5) }
 0x114   : > { %v1433_v52 = vpop.f32.mrf.mxu0  ;;  %v1481_v53 = vpop.f32.mrf.mxu1  ;;  %1091 = vst [vmem:[%s1944_s17 + $0x100] sm:$0xff] (%p1595_p5), %v1090_v24  ;;  %v1096_v27 = vld [vmem:[%s1868_s14 + $0x98] sm:$0xff] (%p1595_p5)  ;;  %1133 = vst [vmem:[%s1944_s17 + $0x250] sm:$0xff] (%p1595_p5), %v1132_v45 }
 0x115   : > { %854 = vst [vmem:[%s1868_s14 + $0xb8] sm:$0xff] %v1433_v52  ;;  %886 = vst [vmem:[%s1868_s14 + $0x1b8] sm:$0xff] %v1481_v53  ;;  %v1146_v52 = vld [vmem:[%s1868_s14 + $0x160] sm:$0xff] (%p1595_p5)  ;;  %v1148_v53 = vld [vmem:[%s1868_s14 + $0x168] sm:$0xff] (%p1595_p5) }
 0x116   : > { %v622_v54 = vpop.f32.mrf.mxu0  ;;  %v782_v55 = vpop.f32.mrf.mxu1  ;;  %v1094_v26 = vld [vmem:[%s1868_s14 + $0x90] sm:$0xff] (%p1595_p5)  ;;  %1097 = vst [vmem:[%s1944_s17 + $0x130] sm:$0xff] (%p1595_p5), %v1096_v27  ;;  %1135 = vst [vmem:[%s1944_s17 + $0x260] sm:$0xff] (%p1595_p5), %v1134_v46 }
 0x117   : > { %853 = vst [vmem:[%s1868_s14 + $0xb0] sm:$0xff] %v622_v54  ;;  %885 = vst [vmem:[%s1868_s14 + $0x1b0] sm:$0xff] %v782_v55  ;;  %v1150_v54 = vld [vmem:[%s1868_s14 + $0x170] sm:$0xff] (%p1595_p5)  ;;  %v1152_v55 = vld [vmem:[%s1868_s14 + $0x178] sm:$0xff] (%p1595_p5) }
 0x118   : > { %v1436_v56 = vpop.f32.mrf.mxu0  ;;  %v1484_v57 = vpop.f32.mrf.mxu1  ;;  %1095 = vst [vmem:[%s1944_s17 + $0x120] sm:$0xff] (%p1595_p5), %v1094_v26  ;;  %v1100_v29 = vld [vmem:[%s1868_s14 + $0xa8] sm:$0xff] (%p1595_p5)  ;;  %1137 = vst [vmem:[%s1944_s17 + $0x270] sm:$0xff] (%p1595_p5), %v1136_v47 }
 0x119   : > { %856 = vst [vmem:[%s1868_s14 + $0xc8] sm:$0xff] %v1436_v56  ;;  %888 = vst [vmem:[%s1868_s14 + $0x1c8] sm:$0xff] %v1484_v57  ;;  %v1154_v56 = vld [vmem:[%s1868_s14 + $0x180] sm:$0xff] (%p1595_p5)  ;;  %v1156_v57 = vld [vmem:[%s1868_s14 + $0x188] sm:$0xff] (%p1595_p5) }
 0x11a   : > { %v632_v58 = vpop.f32.mrf.mxu0  ;;  %v792_v59 = vpop.f32.mrf.mxu1  ;;  %v1098_v28 = vld [vmem:[%s1868_s14 + $0xa0] sm:$0xff] (%p1595_p5)  ;;  %1101 = vst [vmem:[%s1944_s17 + $0x150] sm:$0xff] (%p1595_p5), %v1100_v29  ;;  %1139 = vst [vmem:[%s1944_s17 + $0x280] sm:$0xff] (%p1595_p5), %v1138_v48 }
 0x11b   : > { %855 = vst [vmem:[%s1868_s14 + $0xc0] sm:$0xff] %v632_v58  ;;  %887 = vst [vmem:[%s1868_s14 + $0x1c0] sm:$0xff] %v792_v59  ;;  %v1158_v58 = vld [vmem:[%s1868_s14 + $0x190] sm:$0xff] (%p1595_p5)  ;;  %v1160_v59 = vld [vmem:[%s1868_s14 + $0x198] sm:$0xff] (%p1595_p5) }
 0x11c   : > { %v1439_v60 = vpop.f32.mrf.mxu0  ;;  %v1487_v61 = vpop.f32.mrf.mxu1  ;;  %1099 = vst [vmem:[%s1944_s17 + $0x140] sm:$0xff] (%p1595_p5), %v1098_v28  ;;  %v1104_v31 = vld [vmem:[%s1868_s14 + $0xb8] sm:$0xff] (%p1595_p5)  ;;  %1141 = vst [vmem:[%s1944_s17 + $0x290] sm:$0xff] (%p1595_p5), %v1140_v49 }
 0x11d   : > { %858 = vst [vmem:[%s1868_s14 + $0xd8] sm:$0xff] %v1439_v60  ;;  %890 = vst [vmem:[%s1868_s14 + $0x1d8] sm:$0xff] %v1487_v61  ;;  %v1162_v60 = vld [vmem:[%s1868_s14 + $0x1a0] sm:$0xff] (%p1595_p5)  ;;  %v1164_v61 = vld [vmem:[%s1868_s14 + $0x1a8] sm:$0xff] (%p1595_p5) }
 0x11e   : > { %v642_v62 = vpop.f32.mrf.mxu0  ;;  %v802_v63 = vpop.f32.mrf.mxu1  ;;  %v1102_v30 = vld [vmem:[%s1868_s14 + $0xb0] sm:$0xff] (%p1595_p5)  ;;  %1105 = vst [vmem:[%s1944_s17 + $0x170] sm:$0xff] (%p1595_p5), %v1104_v31  ;;  %1143 = vst [vmem:[%s1944_s17 + $0x2a0] sm:$0xff] (%p1595_p5), %v1142_v50 }
 0x11f   : > { %857 = vst [vmem:[%s1868_s14 + $0xd0] sm:$0xff] %v642_v62  ;;  %889 = vst [vmem:[%s1868_s14 + $0x1d0] sm:$0xff] %v802_v63  ;;  %v1166_v62 = vld [vmem:[%s1868_s14 + $0x1b0] sm:$0xff] (%p1595_p5)  ;;  %v1168_v63 = vld [vmem:[%s1868_s14 + $0x1b8] sm:$0xff] (%p1595_p5) }
 0x120   : > { %v1442_v0 = vpop.f32.mrf.mxu0  ;;  %v1490_v1 = vpop.f32.mrf.mxu1  ;;  %1103 = vst [vmem:[%s1944_s17 + $0x160] sm:$0xff] (%p1595_p5), %v1102_v30  ;;  %v1108_v33 = vld [vmem:[%s1868_s14 + $0xc8] sm:$0xff] (%p1595_p5)  ;;  %1145 = vst [vmem:[%s1944_s17 + $0x2b0] sm:$0xff] (%p1595_p5), %v1144_v51 }
 0x121   : > { %860 = vst [vmem:[%s1868_s14 + $0xe8] sm:$0xff] %v1442_v0  ;;  %892 = vst [vmem:[%s1868_s14 + $0x1e8] sm:$0xff] %v1490_v1  ;;  %v1172_v1 = vld [vmem:[%s1868_s14 + $0x1c8] sm:$0xff] (%p1595_p5) }
 0x122   : > { %v652_v2 = vpop.f32.mrf.mxu0  ;;  %v812_v3 = vpop.f32.mrf.mxu1  ;;  %v1106_v32 = vld [vmem:[%s1868_s14 + $0xc0] sm:$0xff] (%p1595_p5)  ;;  %1109 = vst [vmem:[%s1944_s17 + $0x190] sm:$0xff] (%p1595_p5), %v1108_v33  ;;  %1147 = vst [vmem:[%s1944_s17 + $0x2c0] sm:$0xff] (%p1595_p5), %v1146_v52 }
 0x123   : > { %859 = vst [vmem:[%s1868_s14 + $0xe0] sm:$0xff] %v652_v2  ;;  %891 = vst [vmem:[%s1868_s14 + $0x1e0] sm:$0xff] %v812_v3  ;;  %901 = sbr.rel (!%p1595_p5) target bundleno = 307 (0x133), region = 70  ;;  %v1170_v0 = vld [vmem:[%s1868_s14 + $0x1c0] sm:$0xff] (%p1595_p5) }
 0x124   : > { %v1445_v4 = vpop.f32.mrf.mxu0  ;;  %v1493_v5 = vpop.f32.mrf.mxu1  ;;  %1107 = vst [vmem:[%s1944_s17 + $0x180] sm:$0xff] (%p1595_p5), %v1106_v32  ;;  %v1112_v35 = vld [vmem:[%s1868_s14 + $0xd8] sm:$0xff] (%p1595_p5)  ;;  %1149 = vst [vmem:[%s1944_s17 + $0x2d0] sm:$0xff] (%p1595_p5), %v1148_v53 }
 0x125   : > { %862 = vst [vmem:[%s1868_s14 + $0xf8] sm:$0xff] %v1445_v4  ;;  %894 = vst [vmem:[%s1868_s14 + $0x1f8] sm:$0xff] %v1493_v5  ;;  %v1176_v3 = vld [vmem:[%s1868_s14 + $0x1d8] sm:$0xff] (%p1595_p5) }
 0x126   : > { %v662_v6 = vpop.f32.mrf.mxu0  ;;  %v822_v7 = vpop.f32.mrf.mxu1  ;;  %v1110_v34 = vld [vmem:[%s1868_s14 + $0xd0] sm:$0xff] (%p1595_p5)  ;;  %1113 = vst [vmem:[%s1944_s17 + $0x1b0] sm:$0xff] (%p1595_p5), %v1112_v35  ;;  %1151 = vst [vmem:[%s1944_s17 + $0x2e0] sm:$0xff] (%p1595_p5), %v1150_v54 }
 0x127   : > { %861 = vst [vmem:[%s1868_s14 + $0xf0] sm:$0xff] %v662_v6  ;;  %893 = vst [vmem:[%s1868_s14 + $0x1f0] sm:$0xff] %v822_v7  ;;  %v1174_v2 = vld [vmem:[%s1868_s14 + $0x1d0] sm:$0xff] (%p1595_p5) }
 0x128   : > { %1111 = vst [vmem:[%s1944_s17 + $0x1a0] sm:$0xff] %v1110_v34  ;;  %v1116_v37 = vld [vmem:[%s1868_s14 + $0xe8] sm:$0xff]  ;;  %1153 = vst [vmem:[%s1944_s17 + $0x2f0] sm:$0xff] %v1152_v55 }
 0x129   : > { %1117 = vst [vmem:[%s1944_s17 + $0x1d0] sm:$0xff] %v1116_v37  ;;  %1155 = vst [vmem:[%s1944_s17 + $0x300] sm:$0xff] %v1154_v56  ;;  %v1180_v5 = vld [vmem:[%s1868_s14 + $0x1e8] sm:$0xff] }
 0x12a   : > { %v1114_v36 = vld [vmem:[%s1868_s14 + $0xe0] sm:$0xff]  ;;  %1157 = vst [vmem:[%s1944_s17 + $0x310] sm:$0xff] %v1156_v57  ;;  %1159 = vst [vmem:[%s1944_s17 + $0x320] sm:$0xff] %v1158_v58 }
 0x12b   : > { %1115 = vst [vmem:[%s1944_s17 + $0x1c0] sm:$0xff] %v1114_v36  ;;  %1161 = vst [vmem:[%s1944_s17 + $0x330] sm:$0xff] %v1160_v59  ;;  %v1178_v4 = vld [vmem:[%s1868_s14 + $0x1e0] sm:$0xff] }
 0x12c   : > { %v1120_v39 = vld [vmem:[%s1868_s14 + $0xf8] sm:$0xff]  ;;  %1163 = vst [vmem:[%s1944_s17 + $0x340] sm:$0xff] %v1162_v60  ;;  %1165 = vst [vmem:[%s1944_s17 + $0x350] sm:$0xff] %v1164_v61 }
 0x12d   : > { %1121 = vst [vmem:[%s1944_s17 + $0x1f0] sm:$0xff] %v1120_v39  ;;  %1167 = vst [vmem:[%s1944_s17 + $0x360] sm:$0xff] %v1166_v62  ;;  %v1184_v7 = vld [vmem:[%s1868_s14 + $0x1f8] sm:$0xff] }
 0x12e   : > { %v1118_v38 = vld [vmem:[%s1868_s14 + $0xf0] sm:$0xff]  ;;  %1169 = vst [vmem:[%s1944_s17 + $0x370] sm:$0xff] %v1168_v63  ;;  %1171 = vst [vmem:[%s1944_s17 + $0x380] sm:$0xff] %v1170_v0 }
 0x12f   : > { %1119 = vst [vmem:[%s1944_s17 + $0x1e0] sm:$0xff] %v1118_v38  ;;  %1173 = vst [vmem:[%s1944_s17 + $0x390] sm:$0xff] %v1172_v1  ;;  %v1182_v6 = vld [vmem:[%s1868_s14 + $0x1f0] sm:$0xff] }
 0x130   : > { %1175 = vst [vmem:[%s1944_s17 + $0x3a0] sm:$0xff] %v1174_v2  ;;  %1177 = vst [vmem:[%s1944_s17 + $0x3b0] sm:$0xff] %v1176_v3 }
 0x131   : > { %1179 = vst [vmem:[%s1944_s17 + $0x3c0] sm:$0xff] %v1178_v4  ;;  %1181 = vst [vmem:[%s1944_s17 + $0x3d0] sm:$0xff] %v1180_v5 }
 0x132   : > { %1183 = vst [vmem:[%s1944_s17 + $0x3e0] sm:$0xff] %v1182_v6  ;;  %1185 = vst [vmem:[%s1944_s17 + $0x3f0] sm:$0xff] %v1184_v7 }
 0x133 PF: > { %p9_p10 = scmp.ge.s32.totalorder %s1582_s13, 4   ;;  %s2085_s9 = smov %s1544_s10 }
 0x134   : > { %s2086_s10 = smov %s1593_s16  ;;  %s2087_s11 = smov %s1582_s13 }
 0x135   :  { %11 = sbr.rel (!%p9_p10) target bundleno = 2 (0x2), region = 139 }

</bundles_post_ra>
